<compile_context>
chip_gen: v7x
topology: tpu7x:2x2x1
jax: 0.10.0
libtpu: 0.0.40
codegen_flags: <defaults>
</compile_context>

<pallas_src>
import functools

import jax
import jax.numpy as jnp
from jax import lax
from jax.experimental import pallas as pl
from jax.experimental.pallas import tpu as pltpu

ACTION_DIM = 7
HIDDEN_SIZE = 256
STATE_DIM = 10
HEAD_DIM = 2 * ACTION_DIM  # fused mu + log_std head
LN_EPS = 1e-5
LOG_STD_MIN = -20.0
LOG_STD_MAX = 2.0


def _layernorm(x, gamma, beta):
    # Matches torch.nn.LayerNorm (biased variance, eps inside rsqrt).
    mean = jnp.mean(x, axis=-1, keepdims=True)
    var = jnp.mean((x - mean) ** 2, axis=-1, keepdims=True)
    inv = lax.rsqrt(var + LN_EPS)
    return (x - mean) * inv * gamma + beta


def actor_kernel(
    state_ref,
    w1_ref, b1_ref, g1_ref, be1_ref,
    w2_ref, b2_ref, g2_ref, be2_ref,
    wh_ref, bh_ref,
    out_ref,
):
    x = state_ref[...].astype(jnp.float32)

    # Layer 1: Linear(10 -> 256) + LayerNorm + ReLU.
    # Tiny contraction (10): keep it f32 to preserve input precision (cheap).
    h1 = jnp.dot(x, w1_ref[...], preferred_element_type=jnp.float32) + b1_ref[...]
    h1 = jnp.maximum(_layernorm(h1, g1_ref[...], be1_ref[...]), 0.0)

    # Layer 2: Linear(256 -> 256) on the native bf16 MXU path, f32 accumulation.
    # Elementwise (LayerNorm / ReLU) stays in f32 (v5e VPU/EUP have no bf16).
    h2 = jnp.dot(h1.astype(w2_ref.dtype), w2_ref[...],
                 preferred_element_type=jnp.float32) + b2_ref[...]
    h2 = jnp.maximum(_layernorm(h2, g2_ref[...], be2_ref[...]), 0.0)

    # Fused heads: single (256, 14) matmul; per-lane select between
    # tanh (columns 0..6 -> mu) and clip (columns 7..13 -> log_std).
    head = jnp.dot(h2.astype(wh_ref.dtype), wh_ref[...],
                   preferred_element_type=jnp.float32) + bh_ref[...]
    col = lax.broadcasted_iota(jnp.int32, head.shape, 1)
    out = jnp.where(col < ACTION_DIM,
                    jnp.tanh(head),
                    jnp.clip(head, LOG_STD_MIN, LOG_STD_MAX))
    out_ref[...] = out.astype(out_ref.dtype)


def _round_up(n, m):
    return ((n + m - 1) // m) * m


@functools.partial(jax.jit, static_argnames=("block_b",))
def actor_forward(state, params, *, block_b=1024):
    """Returns (mu, log_std), each [B, ACTION_DIM] float32."""
    (w1, b1, g1, be1, w2, b2, g2, be2, wh, bh) = params
    B = state.shape[0]

    # Batch tile: multiple of 8 sublanes (f32), capped at block_b
    # (block_b ~1024 keeps the double-buffered working set well under
    #  v7x's 32 MiB scoped VMEM; v5e/v6e have more headroom).
    tb = min(_round_up(block_b, 8), _round_up(max(B, 1), 8))
    b_pad = _round_up(max(B, 1), tb)
    if b_pad != B:
        state = jnp.pad(state, ((0, b_pad - B), (0, 0)))

    rep = lambda i: (0, 0)  # weights / biases resident across batch tiles

    bytes_accessed = int(
        b_pad * STATE_DIM * 4 + b_pad * HEAD_DIM * 4
        + w1.size * 4 + w2.size * w2.dtype.itemsize + wh.size * wh.dtype.itemsize
        + (b1.size + g1.size + be1.size + b2.size + g2.size + be2.size + bh.size) * 4
    )
    cost = pl.CostEstimate(
        flops=2 * b_pad * (STATE_DIM * HIDDEN_SIZE
                           + HIDDEN_SIZE * HIDDEN_SIZE
                           + HIDDEN_SIZE * HEAD_DIM),
        transcendentals=b_pad * (HEAD_DIM + 2),  # tanh + 2x rsqrt per row
        bytes_accessed=bytes_accessed,
    )

    out = pl.pallas_call(
        actor_kernel,
        out_shape=jax.ShapeDtypeStruct((b_pad, HEAD_DIM), jnp.float32),
        grid_spec=pltpu.PrefetchScalarGridSpec(
            num_scalar_prefetch=0,
            grid=(b_pad // tb,),
            in_specs=[
                pl.BlockSpec((tb, STATE_DIM), lambda i: (i, 0)),
                pl.BlockSpec((STATE_DIM, HIDDEN_SIZE), rep),
                pl.BlockSpec((1, HIDDEN_SIZE), rep),
                pl.BlockSpec((1, HIDDEN_SIZE), rep),
                pl.BlockSpec((1, HIDDEN_SIZE), rep),
                pl.BlockSpec((HIDDEN_SIZE, HIDDEN_SIZE), rep),
                pl.BlockSpec((1, HIDDEN_SIZE), rep),
                pl.BlockSpec((1, HIDDEN_SIZE), rep),
                pl.BlockSpec((1, HIDDEN_SIZE), rep),
                pl.BlockSpec((HIDDEN_SIZE, HEAD_DIM), rep),
                pl.BlockSpec((1, HEAD_DIM), rep),
            ],
            out_specs=pl.BlockSpec((tb, HEAD_DIM), lambda i: (i, 0)),
        ),
        compiler_params=pltpu.CompilerParams(
            dimension_semantics=("parallel",),  # megacore sharding on v7x
        ),
        cost_estimate=cost,
    )(state, w1, b1, g1, be1, w2, b2, g2, be2, wh, bh)

    out = out[:B]
    return out[:, :ACTION_DIM], out[:, ACTION_DIM:]


# ----------------------------------------------------------------------------
# Parameter construction (mirrors the shapes of the PyTorch module).
# ----------------------------------------------------------------------------
def init_params_f32(key):
    """f32 params; Linear weights pre-transposed to [in, out]; 1-row biases."""
    keys = jax.random.split(key, 4)

    def lin(k, fan_in, fan_out):
        bound = 1.0 / jnp.sqrt(fan_in)
        kw, kb = jax.random.split(k)
        w = jax.random.uniform(kw, (fan_in, fan_out), jnp.float32, -bound, bound)
        b = jax.random.uniform(kb, (1, fan_out), jnp.float32, -bound, bound)
        return w, b

    w1, b1 = lin(keys[0], STATE_DIM, HIDDEN_SIZE)
    w2, b2 = lin(keys[1], HIDDEN_SIZE, HIDDEN_SIZE)
    wmu, bmu = lin(keys[2], HIDDEN_SIZE, ACTION_DIM)
    wls, bls = lin(keys[3], HIDDEN_SIZE, ACTION_DIM)
    return dict(
        w1=w1, b1=b1, g1=jnp.ones((1, HIDDEN_SIZE), jnp.float32),
        be1=jnp.zeros((1, HIDDEN_SIZE), jnp.float32),
        w2=w2, b2=b2, g2=jnp.ones((1, HIDDEN_SIZE), jnp.float32),
        be2=jnp.zeros((1, HIDDEN_SIZE), jnp.float32),
        wmu=wmu, bmu=bmu, wls=wls, bls=bls,
    )


def pack_params(p, matmul_dtype=jnp.bfloat16):
    """Pack f32 params into the fused / bf16 layout the kernel consumes."""
    wh = jnp.concatenate([p["wmu"], p["wls"]], axis=1)   # (256, 14)
    bh = jnp.concatenate([p["bmu"], p["bls"]], axis=1)   # (1, 14)
    return (
        p["w1"], p["b1"], p["g1"], p["be1"],
        p["w2"].astype(matmul_dtype), p["b2"], p["g2"], p["be2"],
        wh.astype(matmul_dtype), bh,
    )


# ----------------------------------------------------------------------------
# References.
# ----------------------------------------------------------------------------
def reference_forward_f32(state, p):
    """Pure-f32 reference matching the PyTorch module exactly."""
    h = jnp.maximum(_layernorm(state @ p["w1"] + p["b1"], p["g1"], p["be1"]), 0.0)
    h = jnp.maximum(_layernorm(h @ p["w2"] + p["b2"], p["g2"], p["be2"]), 0.0)
    mu = jnp.tanh(h @ p["wmu"] + p["bmu"])
    log_std = jnp.clip(h @ p["wls"] + p["bls"], LOG_STD_MIN, LOG_STD_MAX)
    return mu, log_std


def reference_forward_mixed(state, kparams):
    """Reference mirroring the kernel's exact bf16-matmul / f32-elementwise math."""
    (w1, b1, g1, be1, w2, b2, g2, be2, wh, bh) = kparams
    h1 = jnp.dot(state, w1, preferred_element_type=jnp.float32) + b1
    h1 = jnp.maximum(_layernorm(h1, g1, be1), 0.0)
    h2 = jnp.dot(h1.astype(w2.dtype), w2, preferred_element_type=jnp.float32) + b2
    h2 = jnp.maximum(_layernorm(h2, g2, be2), 0.0)
    head = jnp.dot(h2.astype(wh.dtype), wh, preferred_element_type=jnp.float32) + bh
    mu = jnp.tanh(head[:, :ACTION_DIM])
    log_std = jnp.clip(head[:, ACTION_DIM:], LOG_STD_MIN, LOG_STD_MAX)
    return mu, log_std


if __name__ == "__main__":
    key = jax.random.PRNGKey(0)
    k_param, k_state = jax.random.split(key)

    params_f32 = init_params_f32(k_param)
    kparams = pack_params(params_f32)

    ok = True
    for batch in (8, 3):  # aligned batch + ragged batch (exercises padding path)
        state = jax.random.normal(jax.random.fold_in(k_state, batch),
                                  (batch, STATE_DIM), jnp.float32)

        mu, log_std = actor_forward(state, kparams)
        jax.block_until_ready((mu, log_std))
        assert mu.shape == (batch, ACTION_DIM)
        assert log_std.shape == (batch, ACTION_DIM)

        # Tight check vs. a reference that mirrors the kernel's mixed precision.
        mu_m, ls_m = reference_forward_mixed(state, kparams)
        ok &= bool(jnp.allclose(mu, mu_m, atol=2e-4, rtol=2e-4))
        ok &= bool(jnp.allclose(log_std, ls_m, atol=2e-4, rtol=2e-4))

        # Loose check vs. the full-f32 PyTorch-equivalent reference
        # (bf16 matmuls introduce ~1e-2-level deviations).
        mu_r, ls_r = reference_forward_f32(state, params_f32)
        ok &= bool(jnp.allclose(mu, mu_r, atol=5e-2, rtol=5e-2))
        ok &= bool(jnp.allclose(log_std, ls_r, atol=5e-2, rtol=5e-2))

    assert ok
    print("KERNEL_OK")
</pallas_src>

<mosaic_0001>
module attributes {stable_mosaic.version = 11 : i64} {
  func.func @actor_kernel(%arg0: i32, %arg1: memref<8x10xf32, #tpu.memory_space<vmem>>, %arg2: memref<10x256xf32, #tpu.memory_space<vmem>>, %arg3: memref<1x256xf32, #tpu.memory_space<vmem>>, %arg4: memref<1x256xf32, #tpu.memory_space<vmem>>, %arg5: memref<1x256xf32, #tpu.memory_space<vmem>>, %arg6: memref<256x256xbf16, #tpu.memory_space<vmem>>, %arg7: memref<1x256xf32, #tpu.memory_space<vmem>>, %arg8: memref<1x256xf32, #tpu.memory_space<vmem>>, %arg9: memref<1x256xf32, #tpu.memory_space<vmem>>, %arg10: memref<256x14xbf16, #tpu.memory_space<vmem>>, %arg11: memref<1x14xf32, #tpu.memory_space<vmem>>, %arg12: memref<8x14xf32, #tpu.memory_space<vmem>>) attributes {dimension_semantics = [#tpu.dimension_semantics<parallel>], iteration_bounds = array<i64: 1>, scalar_prefetch = 0 : i64, scratch_operands = 0 : i64, tpu.core_type = #tpu.core_type<tc>, window_params = [{transform_indices = @transform_0, window_bounds = array<i64: 8, 10>}, {pipeline_mode = #tpu.pipeline_mode<synchronous>, transform_indices = @transform_1, window_bounds = array<i64: 10, 256>}, {pipeline_mode = #tpu.pipeline_mode<synchronous>, transform_indices = @transform_2, window_bounds = array<i64: 1, 256>}, {pipeline_mode = #tpu.pipeline_mode<synchronous>, transform_indices = @transform_3, window_bounds = array<i64: 1, 256>}, {pipeline_mode = #tpu.pipeline_mode<synchronous>, transform_indices = @transform_4, window_bounds = array<i64: 1, 256>}, {pipeline_mode = #tpu.pipeline_mode<synchronous>, transform_indices = @transform_5, window_bounds = array<i64: 256, 256>}, {pipeline_mode = #tpu.pipeline_mode<synchronous>, transform_indices = @transform_6, window_bounds = array<i64: 1, 256>}, {pipeline_mode = #tpu.pipeline_mode<synchronous>, transform_indices = @transform_7, window_bounds = array<i64: 1, 256>}, {pipeline_mode = #tpu.pipeline_mode<synchronous>, transform_indices = @transform_8, window_bounds = array<i64: 1, 256>}, {pipeline_mode = #tpu.pipeline_mode<synchronous>, transform_indices = @transform_9, window_bounds = array<i64: 256, 14>}, {pipeline_mode = #tpu.pipeline_mode<synchronous>, transform_indices = @transform_10, window_bounds = array<i64: 1, 14>}, {transform_indices = @transform_11, window_bounds = array<i64: 8, 14>}]} {
    %c0 = arith.constant 0 : index
    %c0_0 = arith.constant 0 : index
    %0 = vector.load %arg1[%c0, %c0_0] : memref<8x10xf32, #tpu.memory_space<vmem>>, vector<8x10xf32>
    %c0_1 = arith.constant 0 : index
    %c0_2 = arith.constant 0 : index
    %1 = vector.load %arg2[%c0_1, %c0_2] : memref<10x256xf32, #tpu.memory_space<vmem>>, vector<10x256xf32>
    %cst = arith.constant dense<0.000000e+00> : vector<8x256xf32>
    %2 = tpu.matmul %0, %1, %cst {dimension_numbers = #tpu.dot_dimension_numbers<[1], [0], [0], [1], [0, 0, 1, 1], [], []>} : vector<8x10xf32>, vector<10x256xf32>, vector<8x256xf32> -> vector<8x256xf32>
    %c0_3 = arith.constant 0 : index
    %c0_4 = arith.constant 0 : index
    %3 = vector.load %arg3[%c0_3, %c0_4] : memref<1x256xf32, #tpu.memory_space<vmem>>, vector<1x256xf32>
    %4 = vector.broadcast %3 : vector<1x256xf32> to vector<8x256xf32>
    %5 = arith.addf %2, %4 : vector<8x256xf32>
    %c0_5 = arith.constant 0 : index
    %c0_6 = arith.constant 0 : index
    %6 = vector.load %arg4[%c0_5, %c0_6] : memref<1x256xf32, #tpu.memory_space<vmem>>, vector<1x256xf32>
    %c0_7 = arith.constant 0 : index
    %c0_8 = arith.constant 0 : index
    %7 = vector.load %arg5[%c0_7, %c0_8] : memref<1x256xf32, #tpu.memory_space<vmem>>, vector<1x256xf32>
    %cst_9 = arith.constant dense<0.000000e+00> : vector<8xf32>
    %8 = vector.multi_reduction <add>, %5, %cst_9 [1] : vector<8x256xf32> to vector<8xf32>
    %9 = vector.shape_cast %8 : vector<8xf32> to vector<8x1xf32>
    %cst_10 = arith.constant 2.560000e+02 : f32
    %10 = vector.broadcast %cst_10 : f32 to vector<8x1xf32>
    %11 = arith.divf %9, %10 : vector<8x1xf32>
    %12 = vector.broadcast %11 : vector<8x1xf32> to vector<8x256xf32>
    %13 = arith.subf %5, %12 : vector<8x256xf32>
    %14 = arith.mulf %13, %13 : vector<8x256xf32>
    %cst_11 = arith.constant dense<0.000000e+00> : vector<8xf32>
    %15 = vector.multi_reduction <add>, %14, %cst_11 [1] : vector<8x256xf32> to vector<8xf32>
    %16 = vector.shape_cast %15 : vector<8xf32> to vector<8x1xf32>
    %cst_12 = arith.constant 2.560000e+02 : f32
    %17 = vector.broadcast %cst_12 : f32 to vector<8x1xf32>
    %18 = arith.divf %16, %17 : vector<8x1xf32>
    %cst_13 = arith.constant 9.99999974E-6 : f32
    %19 = vector.broadcast %cst_13 : f32 to vector<8x1xf32>
    %20 = arith.addf %18, %19 : vector<8x1xf32>
    %21 = math.rsqrt %20 : vector<8x1xf32>
    %22 = vector.broadcast %11 : vector<8x1xf32> to vector<8x256xf32>
    %23 = arith.subf %5, %22 : vector<8x256xf32>
    %24 = vector.broadcast %21 : vector<8x1xf32> to vector<8x256xf32>
    %25 = arith.mulf %23, %24 : vector<8x256xf32>
    %26 = vector.broadcast %6 : vector<1x256xf32> to vector<8x256xf32>
    %27 = arith.mulf %25, %26 : vector<8x256xf32>
    %28 = vector.broadcast %7 : vector<1x256xf32> to vector<8x256xf32>
    %29 = arith.addf %27, %28 : vector<8x256xf32>
    %cst_14 = arith.constant 0.000000e+00 : f32
    %30 = vector.broadcast %cst_14 : f32 to vector<8x256xf32>
    %31 = arith.maximumf %29, %30 : vector<8x256xf32>
    %32 = arith.truncf %31 : vector<8x256xf32> to vector<8x256xbf16>
    %c0_15 = arith.constant 0 : index
    %c0_16 = arith.constant 0 : index
    %33 = vector.load %arg6[%c0_15, %c0_16] : memref<256x256xbf16, #tpu.memory_space<vmem>>, vector<256x256xbf16>
    %cst_17 = arith.constant dense<0.000000e+00> : vector<8x256xf32>
    %34 = tpu.matmul %32, %33, %cst_17 {dimension_numbers = #tpu.dot_dimension_numbers<[1], [0], [0], [1], [0, 0, 1, 1], [], []>} : vector<8x256xbf16>, vector<256x256xbf16>, vector<8x256xf32> -> vector<8x256xf32>
    %c0_18 = arith.constant 0 : index
    %c0_19 = arith.constant 0 : index
    %35 = vector.load %arg7[%c0_18, %c0_19] : memref<1x256xf32, #tpu.memory_space<vmem>>, vector<1x256xf32>
    %36 = vector.broadcast %35 : vector<1x256xf32> to vector<8x256xf32>
    %37 = arith.addf %34, %36 : vector<8x256xf32>
    %c0_20 = arith.constant 0 : index
    %c0_21 = arith.constant 0 : index
    %38 = vector.load %arg8[%c0_20, %c0_21] : memref<1x256xf32, #tpu.memory_space<vmem>>, vector<1x256xf32>
    %c0_22 = arith.constant 0 : index
    %c0_23 = arith.constant 0 : index
    %39 = vector.load %arg9[%c0_22, %c0_23] : memref<1x256xf32, #tpu.memory_space<vmem>>, vector<1x256xf32>
    %cst_24 = arith.constant dense<0.000000e+00> : vector<8xf32>
    %40 = vector.multi_reduction <add>, %37, %cst_24 [1] : vector<8x256xf32> to vector<8xf32>
    %41 = vector.shape_cast %40 : vector<8xf32> to vector<8x1xf32>
    %cst_25 = arith.constant 2.560000e+02 : f32
    %42 = vector.broadcast %cst_25 : f32 to vector<8x1xf32>
    %43 = arith.divf %41, %42 : vector<8x1xf32>
    %44 = vector.broadcast %43 : vector<8x1xf32> to vector<8x256xf32>
    %45 = arith.subf %37, %44 : vector<8x256xf32>
    %46 = arith.mulf %45, %45 : vector<8x256xf32>
    %cst_26 = arith.constant dense<0.000000e+00> : vector<8xf32>
    %47 = vector.multi_reduction <add>, %46, %cst_26 [1] : vector<8x256xf32> to vector<8xf32>
    %48 = vector.shape_cast %47 : vector<8xf32> to vector<8x1xf32>
    %cst_27 = arith.constant 2.560000e+02 : f32
    %49 = vector.broadcast %cst_27 : f32 to vector<8x1xf32>
    %50 = arith.divf %48, %49 : vector<8x1xf32>
    %cst_28 = arith.constant 9.99999974E-6 : f32
    %51 = vector.broadcast %cst_28 : f32 to vector<8x1xf32>
    %52 = arith.addf %50, %51 : vector<8x1xf32>
    %53 = math.rsqrt %52 : vector<8x1xf32>
    %54 = vector.broadcast %43 : vector<8x1xf32> to vector<8x256xf32>
    %55 = arith.subf %37, %54 : vector<8x256xf32>
    %56 = vector.broadcast %53 : vector<8x1xf32> to vector<8x256xf32>
    %57 = arith.mulf %55, %56 : vector<8x256xf32>
    %58 = vector.broadcast %38 : vector<1x256xf32> to vector<8x256xf32>
    %59 = arith.mulf %57, %58 : vector<8x256xf32>
    %60 = vector.broadcast %39 : vector<1x256xf32> to vector<8x256xf32>
    %61 = arith.addf %59, %60 : vector<8x256xf32>
    %cst_29 = arith.constant 0.000000e+00 : f32
    %62 = vector.broadcast %cst_29 : f32 to vector<8x256xf32>
    %63 = arith.maximumf %61, %62 : vector<8x256xf32>
    %64 = arith.truncf %63 : vector<8x256xf32> to vector<8x256xbf16>
    %c0_30 = arith.constant 0 : index
    %c0_31 = arith.constant 0 : index
    %65 = vector.load %arg10[%c0_30, %c0_31] : memref<256x14xbf16, #tpu.memory_space<vmem>>, vector<256x14xbf16>
    %cst_32 = arith.constant dense<0.000000e+00> : vector<8x14xf32>
    %66 = tpu.matmul %64, %65, %cst_32 {dimension_numbers = #tpu.dot_dimension_numbers<[1], [0], [0], [1], [0, 0, 1, 1], [], []>} : vector<8x256xbf16>, vector<256x14xbf16>, vector<8x14xf32> -> vector<8x14xf32>
    %c0_33 = arith.constant 0 : index
    %c0_34 = arith.constant 0 : index
    %67 = vector.load %arg11[%c0_33, %c0_34] : memref<1x14xf32, #tpu.memory_space<vmem>>, vector<1x14xf32>
    %68 = vector.broadcast %67 : vector<1x14xf32> to vector<8x14xf32>
    %69 = arith.addf %66, %68 : vector<8x14xf32>
    %70 = tpu.iota {dimensions = array<i32: 1>} : vector<8x14xi32>
    %c7_i32 = arith.constant 7 : i32
    %71 = vector.broadcast %c7_i32 : i32 to vector<8x14xi32>
    %72 = arith.cmpi slt, %70, %71 : vector<8x14xi32>
    %73 = math.tanh %69 : vector<8x14xf32>
    %cst_35 = arith.constant -2.000000e+01 : f32
    %cst_36 = arith.constant 2.000000e+00 : f32
    %74 = vector.broadcast %cst_35 : f32 to vector<8x14xf32>
    %75 = arith.maximumf %74, %69 : vector<8x14xf32>
    %76 = vector.broadcast %cst_36 : f32 to vector<8x14xf32>
    %77 = arith.minimumf %76, %75 : vector<8x14xf32>
    %78 = arith.select %72, %73, %77 : vector<8x14xi1>, vector<8x14xf32>
    %c0_37 = arith.constant 0 : index
    %c0_38 = arith.constant 0 : index
    %79 = vector.load %arg12[%c0_37, %c0_38] : memref<8x14xf32, #tpu.memory_space<vmem>>, vector<8x14xf32>
    tpu.vector_store %arg12[%c0_37, %c0_38], %78 {strides = array<i32>} : memref<8x14xf32, #tpu.memory_space<vmem>>, vector<8x14xf32>,
    return
  }
  func.func @transform_0(%arg0: i32) -> (i32, i32) {
    %c0_i32 = arith.constant 0 : i32
    %c0_i32_0 = arith.constant 0 : i32
    return %arg0, %c0_i32 : i32, i32
  }
  func.func @transform_1(%arg0: i32) -> (i32, i32) {
    %c0_i32 = arith.constant 0 : i32
    %c0_i32_0 = arith.constant 0 : i32
    %c0_i32_1 = arith.constant 0 : i32
    return %c0_i32, %c0_i32_0 : i32, i32
  }
  func.func @transform_2(%arg0: i32) -> (i32, i32) {
    %c0_i32 = arith.constant 0 : i32
    %c0_i32_0 = arith.constant 0 : i32
    %c0_i32_1 = arith.constant 0 : i32
    return %c0_i32, %c0_i32_0 : i32, i32
  }
  func.func @transform_3(%arg0: i32) -> (i32, i32) {
    %c0_i32 = arith.constant 0 : i32
    %c0_i32_0 = arith.constant 0 : i32
    %c0_i32_1 = arith.constant 0 : i32
    return %c0_i32, %c0_i32_0 : i32, i32
  }
  func.func @transform_4(%arg0: i32) -> (i32, i32) {
    %c0_i32 = arith.constant 0 : i32
    %c0_i32_0 = arith.constant 0 : i32
    %c0_i32_1 = arith.constant 0 : i32
    return %c0_i32, %c0_i32_0 : i32, i32
  }
  func.func @transform_5(%arg0: i32) -> (i32, i32) {
    %c0_i32 = arith.constant 0 : i32
    %c0_i32_0 = arith.constant 0 : i32
    %c0_i32_1 = arith.constant 0 : i32
    return %c0_i32, %c0_i32_0 : i32, i32
  }
  func.func @transform_6(%arg0: i32) -> (i32, i32) {
    %c0_i32 = arith.constant 0 : i32
    %c0_i32_0 = arith.constant 0 : i32
    %c0_i32_1 = arith.constant 0 : i32
    return %c0_i32, %c0_i32_0 : i32, i32
  }
  func.func @transform_7(%arg0: i32) -> (i32, i32) {
    %c0_i32 = arith.constant 0 : i32
    %c0_i32_0 = arith.constant 0 : i32
    %c0_i32_1 = arith.constant 0 : i32
    return %c0_i32, %c0_i32_0 : i32, i32
  }
  func.func @transform_8(%arg0: i32) -> (i32, i32) {
    %c0_i32 = arith.constant 0 : i32
    %c0_i32_0 = arith.constant 0 : i32
    %c0_i32_1 = arith.constant 0 : i32
    return %c0_i32, %c0_i32_0 : i32, i32
  }
  func.func @transform_9(%arg0: i32) -> (i32, i32) {
    %c0_i32 = arith.constant 0 : i32
    %c0_i32_0 = arith.constant 0 : i32
    %c0_i32_1 = arith.constant 0 : i32
    return %c0_i32, %c0_i32_0 : i32, i32
  }
  func.func @transform_10(%arg0: i32) -> (i32, i32) {
    %c0_i32 = arith.constant 0 : i32
    %c0_i32_0 = arith.constant 0 : i32
    %c0_i32_1 = arith.constant 0 : i32
    return %c0_i32, %c0_i32_0 : i32, i32
  }
  func.func @transform_11(%arg0: i32) -> (i32, i32) {
    %c0_i32 = arith.constant 0 : i32
    %c0_i32_0 = arith.constant 0 : i32
    return %arg0, %c0_i32 : i32, i32
  }
}

</mosaic_0001>

<bundles_post_ra>
// kernel: actor_forward.1
= control target key start
LH: loop header
LB: loop body
LE: loop exit
PB: predicated region body
PF: predicated region fallthrough
CT: control target
= control target key end

     0   :  { %16 = vsyncpa [#allocation3], 0  ;;  %s862_s17 = smov [#allocation2]   ;;  %s1044_s0 = inlined_call_operand.vmem [shape: f32[8,10], index: 0, kind: input, shape index: {}]   ;;  %s1045_s1 = inlined_call_operand.vmem [shape: f32[10,256], index: 1, kind: input, shape index: {}]   ;;  %s1046_s2 = inlined_call_operand.vmem [shape: f32[1,256], index: 2, kind: input, shape index: {}]   ;;  %s1047_s3 = inlined_call_operand.vmem [shape: f32[1,256], index: 3, kind: input, shape index: {}]   ;;  %s1048_s4 = inlined_call_operand.vmem [shape: f32[1,256], index: 4, kind: input, shape index: {}]   ;;  %s1049_s5 = inlined_call_operand.hbm [shape: bf16[256,256], index: 5, kind: input, shape index: {}]   ;;  %s1050_s6 = inlined_call_operand.vmem [shape: f32[1,256], index: 6, kind: input, shape index: {}]   ;;  %s1051_s7 = inlined_call_operand.vmem [shape: f32[1,256], index: 7, kind: input, shape index: {}]   ;;  %s1052_s8 = inlined_call_operand.vmem [shape: f32[1,256], index: 8, kind: input, shape index: {}]   ;;  %s1053_s9 = inlined_call_operand.vmem [shape: bf16[256,14], index: 9, kind: input, shape index: {}]   ;;  %s1054_s10 = inlined_call_operand.vmem [shape: f32[1,14], index: 10, kind: input, shape index: {}]   ;;  %s1055_s11 = inlined_call_operand.vmem [shape: f32[8,14], index: 11, kind: output, shape index: {}]  }
   0x1   :  { %s32_s18 = sshll.u32 %s862_s17, 4  ;;  %s838_s21 = scalar_lea.hbm %s1049_s5, 4096  ;;  %s33_s18 = int_to_ptr.vmem [resolvable:$true] %s32_s18 }
   0x2   :  { %p839_p0 = scmp.ne.s32.totalorder %s1049_s5, %s838_s21  ;;  %p842_p1 = scmp.lt.u32.totalorder %s838_s21, %s1049_s5 }
   0x4   :  { %p844_p2 = pnand %p842_p1, %p839_p0 }
   0x6   :  { %847 = shalt.err (!%p844_p2)
}
   0x7   :  { %s848_s26 = scalar_lea.vmem %s33_s18, 4096  ;;  %p853_p4 = scmp.lt.s32.totalorder %s33_s18, %s33_s18 }
   0x8   :  { %p849_p3 = scmp.ne.s32.totalorder %s33_s18, %s848_s26  ;;  %p854_p5 = scmp.lt.s32.totalorder %s848_s26, %s848_s26 }
   0xa   :  { %p855_p6 = por %p854_p5, %p853_p4 }
   0xc   :  { %p856_p7 = pnand %p855_p6, %p849_p3 }
   0xe   :  { %859 = shalt.err (!%p856_p7)
}
   0xf   :  { %s863_s27 = smov 128   ;;  %s864_s28 = smov 8  }
  0x10   :  { %38 = dma.hbm_to_vmem [thread:$0]  %s1049_s5, 4096, %s33_s18, [#allocation3], %s863_s27, %s863_s27, %s864_s28  }
  0x11   :  { %860 = dma.done.wait [#allocation3], 4096  }
  0x12   :  { %861 = vsyncadd [#allocation3], 4294963200  ;;  %v865_v0 = vmov 0.0   ;;  %vm74_vm0 = vcmask 1041408   ;;  %vm866_vm1 = vmmov 1   ;;  %v55_v1 = vld [vmem:[%s1045_s1 + $0x8] sm:$0xff]  ;;  %v60_v8 = vlaneseq }
  0x13   :  { %145 = vmatprep.mubr.f32.mxu0 %v865_v0  ;;  %vm758_vm2 = vmpackc.low %vm74_vm0, %vm866_vm1  ;;  %v57_v2 = vld [vmem:[%s1045_s1 + $0x18] sm:$0x3]  ;;  %v54_v3 = vld [vmem:[%s1045_s1] sm:$0xff]  ;;  %vm70_vm3 = vcmask 80896   ;;  %vm676_vm5 = vcmask 113664  }
  0x14   :  { %v757_v4 = vpack.c.bf16 %v57_v2, %v55_v1  ;;  %v56_v5 = vld [vmem:[%s1045_s1 + $0x10] sm:$0x3]  ;;  %v53_v7 = vld [vmem:[%s1044_s0] sm:$0xff]  ;;  %v61_v9 = vshrl.u32 %v60_v8, 7  ;;  %v771_v22 = vld [vmem:[#allocation2 + $0x14] ss:$8 sps:$4 sm:$0xff]  }
  0x15   :  { %v760_v6 = vpack.c.bf16 %v56_v5, %v54_v3  ;;  %v58_v11 = vld [vmem:[%s1046_s2] sm:$0x3]  ;;  %v768_v20 = vld [vmem:[#allocation2 + $0x4] ss:$8 sps:$4 sm:$0xff]   ;;  %v773_v23 = vld [vmem:[#allocation2 + $0x10] ss:$8 sps:$4 sm:$0xff]  }
  0x16   :  { %759 = vmatprep.subr.msk.bf16.mxu0 %vm758_vm2, %v757_v4  ;;  %v955_v10 = vsub.s32 0, %v61_v9  ;;  %v960_v12 = vsub.s32 1, %v61_v9  ;;  %v770_v21 = vld [vmem:[#allocation2] ss:$8 sps:$4 sm:$0xff]   ;;  %405 = vmatprep.subr.bf16.mxu1 %v768_v20  ;;  %v774_v24 = vld [vmem:[#allocation2 + $0x24] ss:$8 sps:$4 sm:$0xff]  }
  0x17   :  { %762 = vmatpush1.bf16.msk.msra.mxu0 %vm758_vm2, %v760_v6  ;;  %406 = vmatpush1.bf16.msra.mxu1 %v770_v21  ;;  %v776_v25 = vld [vmem:[#allocation2 + $0x20] ss:$8 sps:$4 sm:$0xff]   ;;  %v777_v26 = vld [vmem:[#allocation2 + $0x34] ss:$8 sps:$4 sm:$0xff]   ;;  %v779_v27 = vld [vmem:[#allocation2 + $0x30] ss:$8 sps:$4 sm:$0xff]  }
  0x18   :  { %v63_v13 = vrot.slane %v58_v11, %v955_v10  ;;  %v67_v14 = vrot.slane %v58_v11, %v960_v12  ;;  %407 = vmatprep.subr.bf16.mxu1 %v771_v22  ;;  %v780_v28 = vld [vmem:[#allocation2 + $0x44] ss:$8 sps:$4 sm:$0xff]   ;;  %v782_v29 = vld [vmem:[#allocation2 + $0x40] ss:$8 sps:$4 sm:$0xff]   ;;  %v783_v30 = vld [vmem:[#allocation2 + $0x54] ss:$8 sps:$4 sm:$0xff]  }
  0x19   :  { %v785_v31 = vld [vmem:[#allocation2 + $0x50] ss:$8 sps:$4 sm:$0xff]   ;;  %v786_v32 = vld [vmem:[#allocation2 + $0x64] ss:$8 sps:$4 sm:$0xff]   ;;  %v788_v33 = vld [vmem:[#allocation2 + $0x60] ss:$8 sps:$4 sm:$0xff]  }
  0x1a   :  { %685 = vmatmul.mubr.msk.f32.vlgmr.msra.gmra.mrb[0].mxu0 %vm70_vm3, %v53_v7  ;;  %v789_v34 = vld [vmem:[#allocation2 + $0x74] ss:$8 sps:$4 sm:$0xff]   ;;  %v791_v35 = vld [vmem:[#allocation2 + $0x70] ss:$8 sps:$4 sm:$0xff]   ;;  %v792_v36 = vld [vmem:[#allocation2 + $0x84] ss:$8 sps:$4 sm:$0xff]  }
  0x1b   :  { %408 = vmatpush1.bf16.msra.mxu1 %v773_v23  ;;  %v794_v37 = vld [vmem:[#allocation2 + $0x80] ss:$8 sps:$4 sm:$0xff]   ;;  %v795_v38 = vld [vmem:[#allocation2 + $0x94] ss:$8 sps:$4 sm:$0xff]   ;;  %v797_v39 = vld [vmem:[#allocation2 + $0x90] ss:$8 sps:$4 sm:$0xff]  }
  0x1c   :  { %409 = vmatprep.subr.bf16.mxu1 %v774_v24  ;;  %v798_v47 = vld [vmem:[#allocation2 + $0xa4] ss:$8 sps:$4 sm:$0xff]   ;;  %v800_v48 = vld [vmem:[#allocation2 + $0xa0] ss:$8 sps:$4 sm:$0xff]   ;;  %v801_v49 = vld [vmem:[#allocation2 + $0xb4] ss:$8 sps:$4 sm:$0xff]  }
  0x1d   :  { %v803_v50 = vld [vmem:[#allocation2 + $0xb0] ss:$8 sps:$4 sm:$0xff]   ;;  %v804_v51 = vld [vmem:[#allocation2 + $0xc4] ss:$8 sps:$4 sm:$0xff]   ;;  %v806_v52 = vld [vmem:[#allocation2 + $0xc0] ss:$8 sps:$4 sm:$0xff]  }
  0x1e   :  { %v807_v53 = vld [vmem:[#allocation2 + $0xd4] ss:$8 sps:$4 sm:$0xff]   ;;  %v809_v54 = vld [vmem:[#allocation2 + $0xd0] ss:$8 sps:$4 sm:$0xff]   ;;  %v810_v55 = vld [vmem:[#allocation2 + $0xe4] ss:$8 sps:$4 sm:$0xff]  }
  0x1f   :  { %410 = vmatpush1.bf16.msra.mxu1 %v776_v25  ;;  %v812_v56 = vld [vmem:[#allocation2 + $0xe0] ss:$8 sps:$4 sm:$0xff]   ;;  %v813_v57 = vld [vmem:[#allocation2 + $0xf4] ss:$8 sps:$4 sm:$0xff]   ;;  %v815_v58 = vld [vmem:[#allocation2 + $0xf0] ss:$8 sps:$4 sm:$0xff]  }
  0x20   :  { %411 = vmatprep.subr.bf16.mxu1 %v777_v26  ;;  %v152_v62 = vld [vmem:[%s1047_s3] sm:$0x3] }
  0x21   :  { %v153_v63 = vld [vmem:[%s1048_s4] sm:$0x3]  ;;  %v175_v0 = vrot.slane %v152_v62, %v955_v10  ;;  %v179_v1 = vrot.slane %v152_v62, %v960_v12 }
  0x22   :  { %v188_v4 = vrot.slane %v153_v63, %v955_v10  ;;  %v192_v5 = vrot.slane %v153_v63, %v960_v12 }
  0x23   :  { %412 = vmatpush1.bf16.msra.mxu1 %v779_v27 }
  0x24   :  { %413 = vmatprep.subr.bf16.mxu1 %v780_v28  ;;  %v816_v28 = vld [vmem:[%s1053_s9 + $0x40] sm:$0xff]  }
  0x25   :  { %735 = vmatprep.subr.bf16.mxu0 %v816_v28 }
  0x27   :  { %414 = vmatpush1.bf16.msra.mxu1 %v782_v29  ;;  %v817_v29 = vld [vmem:[%s1053_s9] sm:$0xff]  }
  0x28   :  { %415 = vmatprep.subr.bf16.mxu1 %v783_v30  ;;  %v818_v30 = vld [vmem:[%s1053_s9 + $0x48] sm:$0xff]   ;;  %736 = vmatpush3.bf16.msra.mxu0 %v817_v29 }
  0x29   :  { %737 = vmatprep.subr.bf16.mxu0 %v818_v30 }
  0x2b   :  { %416 = vmatpush1.bf16.msra.mxu1 %v785_v31  ;;  %v819_v31 = vld [vmem:[%s1053_s9 + $0x8] sm:$0xff]  }
  0x2c   :  { %417 = vmatprep.subr.bf16.mxu1 %v786_v32  ;;  %738 = vmatpush3.bf16.msra.mxu0 %v819_v31 }
  0x2f   :  { %418 = vmatpush1.bf16.msra.mxu1 %v788_v33 }
  0x30   :  { %419 = vmatprep.subr.bf16.mxu1 %v789_v34 }
  0x33   :  { %420 = vmatpush1.bf16.msra.mxu1 %v791_v35 }
  0x34   :  { %421 = vmatprep.subr.bf16.mxu1 %v792_v36 }
  0x37   :  { %422 = vmatpush1.bf16.msra.mxu1 %v794_v37 }
  0x38   :  { %423 = vmatprep.subr.bf16.mxu1 %v795_v38 }
  0x3b   :  { %424 = vmatpush1.bf16.msra.mxu1 %v797_v39  ;;  %v820_v39 = vld [vmem:[%s1053_s9 + $0x50] sm:$0xff]  }
  0x3c   :  { %425 = vmatprep.subr.bf16.mxu1 %v798_v47  ;;  %739 = vmatprep.subr.bf16.mxu0 %v820_v39  ;;  %v828_v47 = vld [vmem:[%s1053_s9 + $0x70] sm:$0xff]  }
  0x3f   :  { %426 = vmatpush1.bf16.msra.mxu1 %v800_v48  ;;  %v829_v48 = vld [vmem:[%s1053_s9 + $0x30] sm:$0xff]  }
  0x40   :  { %427 = vmatprep.subr.bf16.mxu1 %v801_v49  ;;  %v830_v49 = vld [vmem:[%s1053_s9 + $0x78] sm:$0xff]  }
  0x43   :  { %428 = vmatpush1.bf16.msra.mxu1 %v803_v50  ;;  %v831_v50 = vld [vmem:[%s1053_s9 + $0x38] sm:$0xff]  }
  0x44   :  { %429 = vmatprep.subr.bf16.mxu1 %v804_v51 }
  0x47   :  { %430 = vmatpush1.bf16.msra.mxu1 %v806_v52 }
  0x48   :  { %431 = vmatprep.subr.bf16.mxu1 %v807_v53 }
  0x4b   :  { %432 = vmatpush1.bf16.msra.mxu1 %v809_v54  ;;  %v446_v54 = vld [vmem:[%s1051_s7] sm:$0x3] }
  0x4c   :  { %433 = vmatprep.subr.bf16.mxu1 %v810_v55  ;;  %v447_v55 = vld [vmem:[%s1052_s8] sm:$0x3] }
  0x4d   :  { %v485_v62 = vrot.slane %v447_v55, %v960_v12 }
  0x4f   :  { %434 = vmatpush1.bf16.msra.mxu1 %v812_v56  ;;  %v468_v56 = vrot.slane %v446_v54, %v955_v10 }
  0x50   :  { %435 = vmatprep.subr.bf16.mxu1 %v813_v57  ;;  %v472_v57 = vrot.slane %v446_v54, %v960_v12 }
  0x53   :  { %436 = vmatpush1.bf16.msra.mxu1 %v815_v58 }
  0xed   :  { %v147_v15 = vpop.f32.mrb[0].mxu0 }
  0xee   :  { %v148_v16 = vadd.f32 %v147_v15, %v63_v13  ;;  %v149_v17 = vpop.f32.mrb[1].mxu0 }
  0xef   :  { %v150_v18 = vadd.f32 %v149_v17, %v67_v14 }
  0xf1   :  { %v154_v19 = vadd.f32 %v150_v18, %v148_v16 }
  0xf3   :  { %155 = vadd.xlane.f32.xlu0 %v154_v19 }
 0x180   :  { %v156_v40 = vpop.xlane.xlu0 %155 }
 0x181   :  { %v158_v41 = vmul.f32 0.00390625, %v156_v40  ;;  %v821_v40 = vld [vmem:[%s1053_s9 + $0x10] sm:$0xff]  }
 0x182   :  { %740 = vmatpush3.bf16.msra.mxu0 %v821_v40 }
 0x183   :  { %v159_v42 = vsub.f32 %v148_v16, %v158_v41  ;;  %v160_v43 = vsub.f32 %v150_v18, %v158_v41  ;;  %v233_v18 = vld [vmem:[%s1050_s6] sm:$0x3]  ;;  %v822_v41 = vld [vmem:[%s1053_s9 + $0x58] sm:$0xff]  }
 0x184   :  { %v238_v19 = vrot.slane %v233_v18, %v955_v10  ;;  %v242_v20 = vrot.slane %v233_v18, %v960_v12  ;;  %741 = vmatprep.subr.bf16.mxu0 %v822_v41 }
 0x185   :  { %v161_v44 = vmul.f32 %v159_v42, %v159_v42  ;;  %v162_v45 = vmul.f32 %v160_v43, %v160_v43 }
 0x187   :  { %v163_v46 = vadd.f32 %v162_v45, %v161_v44  ;;  %v825_v44 = vld [vmem:[%s1053_s9 + $0x20] sm:$0xff]   ;;  %v826_v45 = vld [vmem:[%s1053_s9 + $0x68] sm:$0xff]  }
 0x189   :  { %164 = vadd.xlane.f32.xlu0 %v163_v46  ;;  %v827_v46 = vld [vmem:[%s1053_s9 + $0x28] sm:$0xff]  }
 0x216   :  { %v165_v59 = vpop.xlane.xlu0 %164 }
 0x217   :  { %v166_v60 = vmul.f32 0.00390625, %v165_v59 }
 0x219   :  { %v167_v61 = vadd.f32 1e-05, %v166_v60 }
 0x21b   :  { %832 = vrsqrt.f32 %v167_v61  ;;  %v481_v61 = vrot.slane %v447_v55, %v955_v10 }
 0x225   :  { %v833_v2 = vpop.eup %832 }
 0x226   :  { %v170_v3 = vmul.f32 %v833_v2, %v160_v43  ;;  %v169_v6 = vmul.f32 %v833_v2, %v159_v42  ;;  %v823_v42 = vld [vmem:[%s1053_s9 + $0x18] sm:$0xff]   ;;  %v824_v43 = vld [vmem:[%s1053_s9 + $0x60] sm:$0xff]  }
 0x227   :  { %742 = vmatpush3.bf16.msra.mxu0 %v823_v42 }
 0x228   :  { %v183_v7 = vmul.f32 %v179_v1, %v170_v3  ;;  %v182_v9 = vmul.f32 %v175_v0, %v169_v6  ;;  %743 = vmatprep.subr.bf16.mxu0 %v824_v43 }
 0x22a   :  { %v196_v11 = vadd.f32 %v192_v5, %v183_v7  ;;  %v195_v13 = vadd.f32 %v188_v4, %v182_v9  ;;  %v718_v9 = vld [vmem:[%s1054_s10] ss:$0 sm:$0xff] }
 0x22b   :  { %744 = vmatpush3.bf16.msra.mxu0 %v825_v44 }
 0x22c   :  { %v198_v14 = vmax.f32 %v196_v11, 0.0  ;;  %v197_v15 = vmax.f32 %v195_v13, 0.0  ;;  %745 = vmatprep.subr.bf16.mxu0 %v826_v45 }
 0x22e   :  { %v200_v16 = vpack.c.bf16 %v198_v14, %v198_v14  ;;  %v199_v17 = vpack.c.bf16 %v197_v15, %v197_v15  ;;  %v670_v15 = vand.u32 127, %v60_v8 }
 0x22f   :  { %746 = vmatpush3.bf16.msra.mxu0 %v827_v46 }
 0x230   :  { %437 = vmatprep.mubr.bf16.mxu1 %v200_v16  ;;  %747 = vmatprep.subr.bf16.mxu0 %v828_v47  ;;  %vm671_vm4 = vcmp.lt.s32.totalorder %v670_v15, 7 }
 0x231   :  { %438 = vmatmul.mubr.bf16.vlgmr.msra.gmra.mrb[0].mxu1 %v199_v17 }
 0x233   :  { %748 = vmatpush3.bf16.msra.mxu0 %v829_v48 }
 0x234   :  { %749 = vmatprep.subr.bf16.mxu0 %v830_v49 }
 0x237   :  { %750 = vmatpush3.bf16.msra.mxu0 %v831_v50 }
 0x304   :  { %v439_v21 = vpop.f32.mrb[0].mxu1 }
 0x305   :  { %v440_v22 = vadd.f32 %v439_v21, %v238_v19  ;;  %v441_v23 = vpop.f32.mrb[1].mxu1 }
 0x306   :  { %v442_v24 = vadd.f32 %v441_v23, %v242_v20  ;;  %v443_v25 = vpop.f32.mrb[2].mxu1 }
 0x307   :  { %v444_v26 = vpop.f32.mrb[3].mxu1 }
 0x308   :  { %v448_v27 = vadd.f32 %v442_v24, %v440_v22 }
 0x30a   :  { %449 = vadd.xlane.f32.xlu1 %v448_v27 }
 0x397   :  { %v450_v32 = vpop.xlane.xlu1 %449 }
 0x398   :  { %v451_v33 = vmul.f32 0.00390625, %v450_v32 }
 0x39a   :  { %v452_v34 = vsub.f32 %v440_v22, %v451_v33  ;;  %v453_v35 = vsub.f32 %v442_v24, %v451_v33 }
 0x39c   :  { %v454_v36 = vmul.f32 %v452_v34, %v452_v34  ;;  %v455_v37 = vmul.f32 %v453_v35, %v453_v35 }
 0x39e   :  { %v456_v38 = vadd.f32 %v455_v37, %v454_v36 }
 0x3a0   :  { %457 = vadd.xlane.f32.xlu1 %v456_v38 }
 0x42d   :  { %v458_v51 = vpop.xlane.xlu1 %457 }
 0x42e   :  { %v459_v52 = vmul.f32 0.00390625, %v458_v51 }
 0x430   :  { %v460_v53 = vadd.f32 1e-05, %v459_v52 }
 0x432   :  { %834 = vrsqrt.f32 %v460_v53 }
 0x43c   :  { %v835_v58 = vpop.eup %834 }
 0x43d   :  { %v462_v59 = vmul.f32 %v835_v58, %v452_v34  ;;  %v463_v60 = vmul.f32 %v835_v58, %v453_v35 }
 0x43f   :  { %v476_v63 = vmul.f32 %v472_v57, %v463_v60  ;;  %v475_v0 = vmul.f32 %v468_v56, %v462_v59 }
 0x441   :  { %v489_v1 = vadd.f32 %v485_v62, %v476_v63  ;;  %v488_v2 = vadd.f32 %v481_v61, %v475_v0 }
 0x443   :  { %v491_v3 = vmax.f32 %v489_v1, 0.0  ;;  %v490_v4 = vmax.f32 %v488_v2, 0.0 }
 0x445   :  { %v493_v5 = vpack.c.bf16 %v491_v3, %v491_v3  ;;  %v492_v6 = vpack.c.bf16 %v490_v4, %v490_v4 }
 0x447   :  { %661 = vmatprep.mubr.bf16.mxu0 %v493_v5 }
 0x448   :  { %662 = vmatmul.mubr.bf16.vlgmr.msra.gmra.mrb[4].mxu0 %v492_v6 }
 0x51b   :  { %v751_v7 = vpop.f32.mrb[4].mxu0 }
 0x51c   :  { %v752_v11 = vpop.f32.mrb[5].mxu0 }
 0x51d   :  { %v753_v13 = vadd.f32 %v752_v11, %v751_v7  ;;  %v754_v10 = vpop.f32.mrb[6].mxu0 }
 0x51e   :  { %v755_v14 = vpop.f32.mrb[7].mxu0 }
 0x51f   :  { %v664_v12 = vadd.f32 %v753_v13, %v718_v9 }
 0x521   :  { %836 = vtanh.f32 %v664_v12  ;;  %v673_v16 = vmax.f32 %v664_v12, -20.0 }
 0x523   :  { %v674_v17 = vmin.f32 %v673_v16, 2.0 }
 0x52b   :  { %v837_v18 = vpop.eup %836 }
 0x52c   :  { %v675_v19 = vsel %vm671_vm4, %v837_v18, %v674_v17 }
 0x52d   :  { %677 = vst.msk [vmem:[%s1055_s11] sm:$0xff] %vm676_vm5, %v675_v19 }
 0x52e   :  { %682 = vsyncpa [#allocation3], 1 }

</bundles_post_ra>
